<compile_context>
chip_gen: v7x
topology: tpu7x:2x2x1
jax: 0.10.0
libtpu: 0.0.40
codegen_flags: <defaults>
</compile_context>

<pallas_src>
import jax
import jax.numpy as jnp
from jax.experimental import pallas as pl
from jax.experimental.pallas import tpu as pltpu

# Logical (PyTorch) layer sizes.
N_IN = 784
N_H1 = 256
N_H2 = 128
N_H3 = 64
N_H4 = 32
N_OUT = 10

# Lane-padded (multiple-of-128) widths used inside the kernel.
P_H3 = 128
P_H4 = 128
P_OUT = 128

TILE_B = 512          # batch rows per grid step (review: sweep 512-1024)
NEG_INF = -1e30       # bias for padded logit columns -> exp underflows to 0


def _mlp_kernel(x_ref,
                w1_ref, b1_ref,
                w2_ref, b2_ref,
                w3_ref, b3_ref,
                w4_ref, b4_ref,
                w5_ref, b5_ref,
                o_ref):
    # x arrives already in bf16 (cast once in the wrapper); weights are bf16;
    # all accumulation, bias, ReLU and softmax math stays f32.
    h = jnp.dot(x_ref[...], w1_ref[...], preferred_element_type=jnp.float32)
    h = jnp.maximum(h + b1_ref[...], 0.0)

    h = jnp.dot(h.astype(jnp.bfloat16), w2_ref[...],
                preferred_element_type=jnp.float32)
    h = jnp.maximum(h + b2_ref[...], 0.0)

    h = jnp.dot(h.astype(jnp.bfloat16), w3_ref[...],
                preferred_element_type=jnp.float32)
    h = jnp.maximum(h + b3_ref[...], 0.0)

    h = jnp.dot(h.astype(jnp.bfloat16), w4_ref[...],
                preferred_element_type=jnp.float32)
    h = jnp.maximum(h + b4_ref[...], 0.0)

    logits = jnp.dot(h.astype(jnp.bfloat16), w5_ref[...],
                     preferred_element_type=jnp.float32) + b5_ref[...]

    # Padded logit columns carry bias -1e30, so they drop out of max and sum.
    m = jnp.max(logits, axis=1, keepdims=True)
    e = jnp.exp(logits - m)
    denom = jnp.sum(e, axis=1, keepdims=True)
    # Exact reciprocal on the (TILE_B, 1) column: rows sum to 1 to f32
    # precision; the cost is negligible on an HBM-bound kernel.
    o_ref[...] = e * pl.reciprocal(denom, approx=False)


def _round_up(n, m):
    return ((n + m - 1) // m) * m


def nn_forward(x, kernel_params, tile_b=TILE_B):
    """x: [B, 784] float; kernel_params: packed (bf16 weights, f32 biases)."""
    B = x.shape[0]
    # Clamp the tile for small batches so a B=8 call doesn't pad/DMA 512 rows.
    # Multiple of 16 keeps bf16 sublane packing / (8,128) block rules happy.
    tile_b = min(tile_b, _round_up(B, 16))
    n_tiles = pl.cdiv(B, tile_b)
    B_pad = n_tiles * tile_b

    # bf16 x: halves the dominant HBM stream; numerically identical to the
    # previous in-kernel cast (the MXU consumed bf16 x anyway).
    x = x.astype(jnp.bfloat16)
    if B_pad != B:
        x = jnp.pad(x, ((0, B_pad - B), (0, 0)))

    def const_spec(arr):
        # Full-shape block, constant index map -> stays resident in VMEM.
        return pl.BlockSpec(arr.shape, lambda i: (0, 0))

    in_specs = [pl.BlockSpec((tile_b, N_IN), lambda i: (i, 0))]
    in_specs += [const_spec(p) for p in kernel_params]
    out_specs = pl.BlockSpec((tile_b, P_OUT), lambda i: (i, 0))

    weight_bytes = sum(int(p.size) * p.dtype.itemsize for p in kernel_params)
    cost = pl.CostEstimate(
        flops=2 * B_pad * (N_IN * N_H1 + N_H1 * N_H2 + N_H2 * P_H3
                           + P_H3 * P_H4 + P_H4 * P_OUT),
        transcendentals=B_pad * P_OUT,
        # bf16 x stream + resident weights + f32 output slab.
        bytes_accessed=weight_bytes + B_pad * N_IN * 2 + B_pad * P_OUT * 4,
    )

    out = pl.pallas_call(
        _mlp_kernel,
        out_shape=jax.ShapeDtypeStruct((B_pad, P_OUT), jnp.float32),
        grid=(n_tiles,),
        in_specs=in_specs,
        out_specs=out_specs,
        compiler_params=pltpu.CompilerParams(
            # Batch axis is embarrassingly parallel -> shards across the two
            # TensorCores on v7x when n_tiles >= 2.
            dimension_semantics=("parallel",),
            # >= 32 MiB: v5e's default scoped VMEM is only 16 MiB.
            vmem_limit_bytes=32 * 1024 * 1024,
        ),
        cost_estimate=cost,
    )(x, *kernel_params)
    return out[:B, :N_OUT]


def init_params(key):
    """PyTorch nn.Linear-style U(-1/sqrt(fan_in), +1/sqrt(fan_in)) init (f32,
    logical unpadded shapes, weights stored [in, out])."""
    dims = [(N_IN, N_H1), (N_H1, N_H2), (N_H2, N_H3), (N_H3, N_H4), (N_H4, N_OUT)]
    params = []
    for fan_in, fan_out in dims:
        key, kw, kb = jax.random.split(key, 3)
        bound = 1.0 / jnp.sqrt(jnp.float32(fan_in))
        w = jax.random.uniform(kw, (fan_in, fan_out), jnp.float32, -bound, bound)
        b = jax.random.uniform(kb, (1, fan_out), jnp.float32, -bound, bound)
        params.extend([w, b])
    return tuple(params)


def pack_params(params):
    """Pad narrow layers to 128 lanes and cast weights to bf16 for the kernel.
    Zero padding is exact (ReLU(0)=0, zero rows contribute nothing); the padded
    output-logit bias is -1e30 (kept in f32!) so padded columns vanish from the
    softmax.  Consumers must slice the kernel output to [:, :10] (nn_forward
    does this)."""
    w1, b1, w2, b2, w3, b3, w4, b4, w5, b5 = params

    def pad_w(w, rows, cols):
        return jnp.pad(w, ((0, rows - w.shape[0]), (0, cols - w.shape[1])))

    def pad_b(b, cols, fill=0.0):
        return jnp.pad(b, ((0, 0), (0, cols - b.shape[1])), constant_values=fill)

    kw1 = w1.astype(jnp.bfloat16)
    kw2 = w2.astype(jnp.bfloat16)
    kw3 = pad_w(w3, N_H2, P_H3).astype(jnp.bfloat16)
    kw4 = pad_w(w4, P_H3, P_H4).astype(jnp.bfloat16)
    kw5 = pad_w(w5, P_H4, P_OUT).astype(jnp.bfloat16)
    kb3 = pad_b(b3, P_H3)
    kb4 = pad_b(b4, P_H4)
    kb5 = pad_b(b5, P_OUT, fill=NEG_INF).astype(jnp.float32)  # must stay f32
    return (kw1, b1, kw2, b2, kw3, kb3, kw4, kb4, kw5, kb5)


def reference_forward(x, params):
    """Pure-JAX reference mirroring the kernel's bf16-weight / f32-accumulate math."""
    w1, b1, w2, b2, w3, b3, w4, b4, w5, b5 = params

    def lin(h, w, b):
        return jnp.dot(h.astype(jnp.bfloat16), w.astype(jnp.bfloat16),
                       preferred_element_type=jnp.float32) + b

    h = jnp.maximum(lin(x, w1, b1), 0.0)
    h = jnp.maximum(lin(h, w2, b2), 0.0)
    h = jnp.maximum(lin(h, w3, b3), 0.0)
    h = jnp.maximum(lin(h, w4, b4), 0.0)
    logits = lin(h, w5, b5)
    return jax.nn.softmax(logits, axis=1)


if __name__ == "__main__":
    key = jax.random.PRNGKey(0)
    key, kx = jax.random.split(key)

    params = init_params(key)          # logical f32 params (PyTorch layout)
    kparams = pack_params(params)      # padded bf16/f32 params fed to the kernel

    # Small batch of flattened 28x28 Fashion-MNIST images -> 784 features.
    B = 8
    x = jax.random.normal(kx, (B, N_IN), jnp.float32)

    out = nn_forward(x, kparams)
    out = jax.block_until_ready(out)

    ref = reference_forward(x, params)
    assert out.shape == (B, N_OUT)
    # bf16 weights/inputs -> slightly looser tolerance than pure f32.
    assert jnp.allclose(out, ref, atol=5e-3, rtol=5e-2), \
        float(jnp.max(jnp.abs(out - ref)))
    # Exact-reciprocal softmax -> rows sum to 1 within f32 rounding.
    assert jnp.allclose(jnp.sum(out, axis=1), jnp.ones((B,), jnp.float32),
                        atol=1e-5)

    # Also exercise the multi-tile (grid > 1) + batch-padding path.
    key, kx2 = jax.random.split(key)
    B2 = 530
    x2 = jax.random.normal(kx2, (B2, N_IN), jnp.float32)
    out2 = jax.block_until_ready(nn_forward(x2, kparams))
    ref2 = reference_forward(x2, params)
    assert out2.shape == (B2, N_OUT)
    assert jnp.allclose(out2, ref2, atol=5e-3, rtol=5e-2), \
        float(jnp.max(jnp.abs(out2 - ref2)))

    print("KERNEL_OK")
</pallas_src>

<mosaic_0001>
module attributes {stable_mosaic.version = 11 : i64} {
  func.func @_mlp_kernel(%arg0: i32, %arg1: memref<16x784xbf16, #tpu.memory_space<vmem>>, %arg2: memref<784x256xbf16, #tpu.memory_space<vmem>>, %arg3: memref<1x256xf32, #tpu.memory_space<vmem>>, %arg4: memref<256x128xbf16, #tpu.memory_space<vmem>>, %arg5: memref<1x128xf32, #tpu.memory_space<vmem>>, %arg6: memref<128x128xbf16, #tpu.memory_space<vmem>>, %arg7: memref<1x128xf32, #tpu.memory_space<vmem>>, %arg8: memref<128x128xbf16, #tpu.memory_space<vmem>>, %arg9: memref<1x128xf32, #tpu.memory_space<vmem>>, %arg10: memref<128x128xbf16, #tpu.memory_space<vmem>>, %arg11: memref<1x128xf32, #tpu.memory_space<vmem>>, %arg12: memref<16x128xf32, #tpu.memory_space<vmem>>) attributes {dimension_semantics = [#tpu.dimension_semantics<parallel>], iteration_bounds = array<i64: 1>, scalar_prefetch = 0 : i64, scratch_operands = 0 : i64, tpu.core_type = #tpu.core_type<tc>, window_params = [{transform_indices = @transform_0, window_bounds = array<i64: 16, 784>}, {pipeline_mode = #tpu.pipeline_mode<synchronous>, transform_indices = @transform_1, window_bounds = array<i64: 784, 256>}, {pipeline_mode = #tpu.pipeline_mode<synchronous>, transform_indices = @transform_2, window_bounds = array<i64: 1, 256>}, {pipeline_mode = #tpu.pipeline_mode<synchronous>, transform_indices = @transform_3, window_bounds = array<i64: 256, 128>}, {pipeline_mode = #tpu.pipeline_mode<synchronous>, transform_indices = @transform_4, window_bounds = array<i64: 1, 128>}, {pipeline_mode = #tpu.pipeline_mode<synchronous>, transform_indices = @transform_5, window_bounds = array<i64: 128, 128>}, {pipeline_mode = #tpu.pipeline_mode<synchronous>, transform_indices = @transform_6, window_bounds = array<i64: 1, 128>}, {pipeline_mode = #tpu.pipeline_mode<synchronous>, transform_indices = @transform_7, window_bounds = array<i64: 128, 128>}, {pipeline_mode = #tpu.pipeline_mode<synchronous>, transform_indices = @transform_8, window_bounds = array<i64: 1, 128>}, {pipeline_mode = #tpu.pipeline_mode<synchronous>, transform_indices = @transform_9, window_bounds = array<i64: 128, 128>}, {pipeline_mode = #tpu.pipeline_mode<synchronous>, transform_indices = @transform_10, window_bounds = array<i64: 1, 128>}, {transform_indices = @transform_11, window_bounds = array<i64: 16, 128>}]} {
    %c0 = arith.constant 0 : index
    %c0_0 = arith.constant 0 : index
    %0 = vector.load %arg1[%c0, %c0_0] : memref<16x784xbf16, #tpu.memory_space<vmem>>, vector<16x784xbf16>
    %c0_1 = arith.constant 0 : index
    %c0_2 = arith.constant 0 : index
    %1 = vector.load %arg2[%c0_1, %c0_2] : memref<784x256xbf16, #tpu.memory_space<vmem>>, vector<784x256xbf16>
    %cst = arith.constant dense<0.000000e+00> : vector<16x256xf32>
    %2 = tpu.matmul %0, %1, %cst {dimension_numbers = #tpu.dot_dimension_numbers<[1], [0], [0], [1], [0, 0, 1, 1], [], []>} : vector<16x784xbf16>, vector<784x256xbf16>, vector<16x256xf32> -> vector<16x256xf32>
    %c0_3 = arith.constant 0 : index
    %c0_4 = arith.constant 0 : index
    %3 = vector.load %arg3[%c0_3, %c0_4] : memref<1x256xf32, #tpu.memory_space<vmem>>, vector<1x256xf32>
    %4 = vector.broadcast %3 : vector<1x256xf32> to vector<16x256xf32>
    %5 = arith.addf %2, %4 : vector<16x256xf32>
    %cst_5 = arith.constant 0.000000e+00 : f32
    %6 = vector.broadcast %cst_5 : f32 to vector<16x256xf32>
    %7 = arith.maximumf %5, %6 : vector<16x256xf32>
    %8 = arith.truncf %7 : vector<16x256xf32> to vector<16x256xbf16>
    %c0_6 = arith.constant 0 : index
    %c0_7 = arith.constant 0 : index
    %9 = vector.load %arg4[%c0_6, %c0_7] : memref<256x128xbf16, #tpu.memory_space<vmem>>, vector<256x128xbf16>
    %cst_8 = arith.constant dense<0.000000e+00> : vector<16x128xf32>
    %10 = tpu.matmul %8, %9, %cst_8 {dimension_numbers = #tpu.dot_dimension_numbers<[1], [0], [0], [1], [0, 0, 1, 1], [], []>} : vector<16x256xbf16>, vector<256x128xbf16>, vector<16x128xf32> -> vector<16x128xf32>
    %c0_9 = arith.constant 0 : index
    %c0_10 = arith.constant 0 : index
    %11 = vector.load %arg5[%c0_9, %c0_10] : memref<1x128xf32, #tpu.memory_space<vmem>>, vector<1x128xf32>
    %12 = vector.broadcast %11 : vector<1x128xf32> to vector<16x128xf32>
    %13 = arith.addf %10, %12 : vector<16x128xf32>
    %cst_11 = arith.constant 0.000000e+00 : f32
    %14 = vector.broadcast %cst_11 : f32 to vector<16x128xf32>
    %15 = arith.maximumf %13, %14 : vector<16x128xf32>
    %16 = arith.truncf %15 : vector<16x128xf32> to vector<16x128xbf16>
    %c0_12 = arith.constant 0 : index
    %c0_13 = arith.constant 0 : index
    %17 = vector.load %arg6[%c0_12, %c0_13] : memref<128x128xbf16, #tpu.memory_space<vmem>>, vector<128x128xbf16>
    %cst_14 = arith.constant dense<0.000000e+00> : vector<16x128xf32>
    %18 = tpu.matmul %16, %17, %cst_14 {dimension_numbers = #tpu.dot_dimension_numbers<[1], [0], [0], [1], [0, 0, 1, 1], [], []>} : vector<16x128xbf16>, vector<128x128xbf16>, vector<16x128xf32> -> vector<16x128xf32>
    %c0_15 = arith.constant 0 : index
    %c0_16 = arith.constant 0 : index
    %19 = vector.load %arg7[%c0_15, %c0_16] : memref<1x128xf32, #tpu.memory_space<vmem>>, vector<1x128xf32>
    %20 = vector.broadcast %19 : vector<1x128xf32> to vector<16x128xf32>
    %21 = arith.addf %18, %20 : vector<16x128xf32>
    %cst_17 = arith.constant 0.000000e+00 : f32
    %22 = vector.broadcast %cst_17 : f32 to vector<16x128xf32>
    %23 = arith.maximumf %21, %22 : vector<16x128xf32>
    %24 = arith.truncf %23 : vector<16x128xf32> to vector<16x128xbf16>
    %c0_18 = arith.constant 0 : index
    %c0_19 = arith.constant 0 : index
    %25 = vector.load %arg8[%c0_18, %c0_19] : memref<128x128xbf16, #tpu.memory_space<vmem>>, vector<128x128xbf16>
    %cst_20 = arith.constant dense<0.000000e+00> : vector<16x128xf32>
    %26 = tpu.matmul %24, %25, %cst_20 {dimension_numbers = #tpu.dot_dimension_numbers<[1], [0], [0], [1], [0, 0, 1, 1], [], []>} : vector<16x128xbf16>, vector<128x128xbf16>, vector<16x128xf32> -> vector<16x128xf32>
    %c0_21 = arith.constant 0 : index
    %c0_22 = arith.constant 0 : index
    %27 = vector.load %arg9[%c0_21, %c0_22] : memref<1x128xf32, #tpu.memory_space<vmem>>, vector<1x128xf32>
    %28 = vector.broadcast %27 : vector<1x128xf32> to vector<16x128xf32>
    %29 = arith.addf %26, %28 : vector<16x128xf32>
    %cst_23 = arith.constant 0.000000e+00 : f32
    %30 = vector.broadcast %cst_23 : f32 to vector<16x128xf32>
    %31 = arith.maximumf %29, %30 : vector<16x128xf32>
    %32 = arith.truncf %31 : vector<16x128xf32> to vector<16x128xbf16>
    %c0_24 = arith.constant 0 : index
    %c0_25 = arith.constant 0 : index
    %33 = vector.load %arg10[%c0_24, %c0_25] : memref<128x128xbf16, #tpu.memory_space<vmem>>, vector<128x128xbf16>
    %cst_26 = arith.constant dense<0.000000e+00> : vector<16x128xf32>
    %34 = tpu.matmul %32, %33, %cst_26 {dimension_numbers = #tpu.dot_dimension_numbers<[1], [0], [0], [1], [0, 0, 1, 1], [], []>} : vector<16x128xbf16>, vector<128x128xbf16>, vector<16x128xf32> -> vector<16x128xf32>
    %c0_27 = arith.constant 0 : index
    %c0_28 = arith.constant 0 : index
    %35 = vector.load %arg11[%c0_27, %c0_28] : memref<1x128xf32, #tpu.memory_space<vmem>>, vector<1x128xf32>
    %36 = vector.broadcast %35 : vector<1x128xf32> to vector<16x128xf32>
    %37 = arith.addf %34, %36 : vector<16x128xf32>
    %cst_29 = arith.constant dense<0xFF800000> : vector<16xf32>
    %38 = vector.multi_reduction <maximumf>, %37, %cst_29 [1] : vector<16x128xf32> to vector<16xf32>
    %39 = vector.shape_cast %38 : vector<16xf32> to vector<16x1xf32>
    %40 = vector.broadcast %39 : vector<16x1xf32> to vector<16x128xf32>
    %41 = arith.subf %37, %40 : vector<16x128xf32>
    %42 = math.exp %41 : vector<16x128xf32>
    %cst_30 = arith.constant dense<0.000000e+00> : vector<16xf32>
    %43 = vector.multi_reduction <add>, %42, %cst_30 [1] : vector<16x128xf32> to vector<16xf32>
    %44 = vector.shape_cast %43 : vector<16xf32> to vector<16x1xf32>
    %45 = tpu.reciprocal %44 : vector<16x1xf32> -> vector<16x1xf32>
    %46 = vector.broadcast %45 : vector<16x1xf32> to vector<16x128xf32>
    %47 = arith.mulf %42, %46 : vector<16x128xf32>
    %c0_31 = arith.constant 0 : index
    %c0_32 = arith.constant 0 : index
    %48 = vector.load %arg12[%c0_31, %c0_32] : memref<16x128xf32, #tpu.memory_space<vmem>>, vector<16x128xf32>
    tpu.vector_store %arg12[%c0_31, %c0_32], %47 {strides = array<i32>} : memref<16x128xf32, #tpu.memory_space<vmem>>, vector<16x128xf32>,
    return
  }
  func.func @transform_0(%arg0: i32) -> (i32, i32) {
    %c0_i32 = arith.constant 0 : i32
    %c0_i32_0 = arith.constant 0 : i32
    return %arg0, %c0_i32 : i32, i32
  }
  func.func @transform_1(%arg0: i32) -> (i32, i32) {
    %c0_i32 = arith.constant 0 : i32
    %c0_i32_0 = arith.constant 0 : i32
    %c0_i32_1 = arith.constant 0 : i32
    return %c0_i32, %c0_i32_0 : i32, i32
  }
  func.func @transform_2(%arg0: i32) -> (i32, i32) {
    %c0_i32 = arith.constant 0 : i32
    %c0_i32_0 = arith.constant 0 : i32
    %c0_i32_1 = arith.constant 0 : i32
    return %c0_i32, %c0_i32_0 : i32, i32
  }
  func.func @transform_3(%arg0: i32) -> (i32, i32) {
    %c0_i32 = arith.constant 0 : i32
    %c0_i32_0 = arith.constant 0 : i32
    %c0_i32_1 = arith.constant 0 : i32
    return %c0_i32, %c0_i32_0 : i32, i32
  }
  func.func @transform_4(%arg0: i32) -> (i32, i32) {
    %c0_i32 = arith.constant 0 : i32
    %c0_i32_0 = arith.constant 0 : i32
    %c0_i32_1 = arith.constant 0 : i32
    return %c0_i32, %c0_i32_0 : i32, i32
  }
  func.func @transform_5(%arg0: i32) -> (i32, i32) {
    %c0_i32 = arith.constant 0 : i32
    %c0_i32_0 = arith.constant 0 : i32
    %c0_i32_1 = arith.constant 0 : i32
    return %c0_i32, %c0_i32_0 : i32, i32
  }
  func.func @transform_6(%arg0: i32) -> (i32, i32) {
    %c0_i32 = arith.constant 0 : i32
    %c0_i32_0 = arith.constant 0 : i32
    %c0_i32_1 = arith.constant 0 : i32
    return %c0_i32, %c0_i32_0 : i32, i32
  }
  func.func @transform_7(%arg0: i32) -> (i32, i32) {
    %c0_i32 = arith.constant 0 : i32
    %c0_i32_0 = arith.constant 0 : i32
    %c0_i32_1 = arith.constant 0 : i32
    return %c0_i32, %c0_i32_0 : i32, i32
  }
  func.func @transform_8(%arg0: i32) -> (i32, i32) {
    %c0_i32 = arith.constant 0 : i32
    %c0_i32_0 = arith.constant 0 : i32
    %c0_i32_1 = arith.constant 0 : i32
    return %c0_i32, %c0_i32_0 : i32, i32
  }
  func.func @transform_9(%arg0: i32) -> (i32, i32) {
    %c0_i32 = arith.constant 0 : i32
    %c0_i32_0 = arith.constant 0 : i32
    %c0_i32_1 = arith.constant 0 : i32
    return %c0_i32, %c0_i32_0 : i32, i32
  }
  func.func @transform_10(%arg0: i32) -> (i32, i32) {
    %c0_i32 = arith.constant 0 : i32
    %c0_i32_0 = arith.constant 0 : i32
    %c0_i32_1 = arith.constant 0 : i32
    return %c0_i32, %c0_i32_0 : i32, i32
  }
  func.func @transform_11(%arg0: i32) -> (i32, i32) {
    %c0_i32 = arith.constant 0 : i32
    %c0_i32_0 = arith.constant 0 : i32
    return %arg0, %c0_i32 : i32, i32
  }
}

</mosaic_0001>

<bundles_post_ra>
// kernel: tpu_custom_call.1
= control target key start
LH: loop header
LB: loop body
LE: loop exit
PB: predicated region body
PF: predicated region fallthrough
CT: control target
= control target key end

     0   :  { %16 = vsyncpa [#allocation3], 0  ;;  %s2391_s0 = inlined_call_operand.hbm [shape: bf16[16,784], index: 0, kind: input, shape index: {}]   ;;  %s2392_s1 = inlined_call_operand.hbm [shape: bf16[784,256], index: 1, kind: input, shape index: {}]   ;;  %s2393_s2 = inlined_call_operand.vmem [shape: f32[1,256], index: 2, kind: input, shape index: {}]   ;;  %s2394_s3 = inlined_call_operand.hbm [shape: bf16[256,128], index: 3, kind: input, shape index: {}]   ;;  %s2395_s4 = inlined_call_operand.vmem [shape: f32[1,128], index: 4, kind: input, shape index: {}]   ;;  %s2396_s5 = inlined_call_operand.hbm [shape: bf16[128,128], index: 5, kind: input, shape index: {}]   ;;  %s2397_s6 = inlined_call_operand.vmem [shape: f32[1,128], index: 6, kind: input, shape index: {}]   ;;  %s2398_s7 = inlined_call_operand.hbm [shape: bf16[128,128], index: 7, kind: input, shape index: {}]   ;;  %s2399_s8 = inlined_call_operand.vmem [shape: f32[1,128], index: 8, kind: input, shape index: {}]   ;;  %s2400_s9 = inlined_call_operand.hbm [shape: bf16[128,128], index: 9, kind: input, shape index: {}]   ;;  %s2401_s10 = inlined_call_operand.vmem [shape: f32[1,128], index: 10, kind: input, shape index: {}]   ;;  %s2402_s11 = inlined_call_operand.hbm [shape: f32[16,128], index: 11, kind: output, shape index: {}]  }
   0x1   :  { %17 = vsyncpa [#allocation6], 0 }
   0x2   :  { %18 = vsyncpa [#allocation9], 0 }
   0x3   :  { %19 = vsyncpa [#allocation12], 0 }
   0x4   :  { %20 = vsyncpa [#allocation4], 0  ;;  %s2168_s17 = smov [#allocation5]   ;;  %s2004_s21 = scalar_lea.hbm %s2392_s1, 12544 }
   0x5   :  { %s38_s18 = sshll.u32 %s2168_s17, 4  ;;  %p2005_p0 = scmp.ne.s32.totalorder %s2392_s1, %s2004_s21  ;;  %s39_s18 = int_to_ptr.vmem [resolvable:$true] %s38_s18 }
   0x6   :  { %p2008_p1 = scmp.lt.u32.totalorder %s2004_s21, %s2392_s1 }
   0x8   :  { %p2010_p2 = pnand %p2008_p1, %p2005_p0 }
   0xa   :  { %2013 = shalt.err (!%p2010_p2)
}
   0xb   :  { %s2014_s26 = scalar_lea.vmem %s39_s18, 12544  ;;  %p2019_p4 = scmp.lt.s32.totalorder %s39_s18, %s39_s18 }
   0xc   :  { %p2015_p3 = scmp.ne.s32.totalorder %s39_s18, %s2014_s26  ;;  %p2020_p5 = scmp.lt.s32.totalorder %s2014_s26, %s2014_s26 }
   0xe   :  { %p2021_p6 = por %p2020_p5, %p2019_p4 }
  0x10   :  { %p2022_p7 = pnand %p2021_p6, %p2015_p3 }
  0x12   :  { %2025 = shalt.err (!%p2022_p7)
}
  0x13   :  { %s2169_s27 = smov 128   ;;  %s2170_s28 = smov 8  }
  0x14   :  { %44 = dma.hbm_to_vmem [thread:$0]  %s2392_s1, 12544, %s39_s18, [#allocation6], %s2169_s27, %s2169_s27, %s2170_s28  }
  0x15   :  { %s2171_s12 = smov [#allocation8]   ;;  %s2172_s14 = smov [#allocation2]  }
  0x16   :  { %s66_s13 = sshll.u32 %s2171_s12, 4  ;;  %s26_s15 = sshll.u32 %s2172_s14, 4  ;;  %s67_s13 = int_to_ptr.vmem [resolvable:$true] %s66_s13  ;;  %s27_s15 = int_to_ptr.vmem [resolvable:$true] %s26_s15 }
  0x17   :  { %s2026_s19 = scalar_lea.hbm %s2396_s5, 1024 }
  0x18   :  { %p2027_p8 = scmp.ne.s32.totalorder %s2396_s5, %s2026_s19  ;;  %p2030_p9 = scmp.lt.u32.totalorder %s2026_s19, %s2396_s5 }
  0x1a   :  { %p2032_p10 = pnand %p2030_p9, %p2027_p8 }
  0x1c   :  { %2035 = shalt.err (!%p2032_p10)
}
  0x1d   :  { %s2036_s1 = scalar_lea.vmem %s67_s13, 1024  ;;  %p2041_p12 = scmp.lt.s32.totalorder %s67_s13, %s67_s13 }
  0x1e   :  { %p2037_p11 = scmp.ne.s32.totalorder %s67_s13, %s2036_s1  ;;  %p2042_p13 = scmp.lt.s32.totalorder %s2036_s1, %s2036_s1 }
  0x20   :  { %p2043_p0 = por %p2042_p13, %p2041_p12 }
  0x22   :  { %p2044_p1 = pnand %p2043_p0, %p2037_p11 }
  0x24   :  { %2047 = shalt.err (!%p2044_p1)
}
  0x25   :  { %s2173_s18 = smov 64   ;;  %s2174_s24 = smov 4  }
  0x26   :  { %72 = dma.hbm_to_vmem [thread:$0]  %s2396_s5, 1024, %s67_s13, [#allocation9], %s2173_s18, %s2173_s18, %s2174_s24  }
  0x27   :  { %s2048_s12 = scalar_lea.hbm %s2391_s0, 896 }
  0x28   :  { %p2049_p2 = scmp.ne.s32.totalorder %s2391_s0, %s2048_s12  ;;  %p2052_p3 = scmp.lt.u32.totalorder %s2048_s12, %s2391_s0 }
  0x2a   :  { %p2054_p4 = pnand %p2052_p3, %p2049_p2 }
  0x2c   :  { %2057 = shalt.err (!%p2054_p4)
}
  0x2d   :  { %s2058_s20 = scalar_lea.vmem %s27_s15, 896  ;;  %p2063_p6 = scmp.lt.s32.totalorder %s27_s15, %s27_s15 }
  0x2e   :  { %p2059_p5 = scmp.ne.s32.totalorder %s27_s15, %s2058_s20  ;;  %p2064_p7 = scmp.lt.s32.totalorder %s2058_s20, %s2058_s20 }
  0x30   :  { %p2065_p8 = por %p2064_p7, %p2063_p6 }
  0x32   :  { %p2066_p9 = pnand %p2065_p8, %p2059_p5 }
  0x34   :  { %2069 = shalt.err (!%p2066_p9)
}
  0x35   :  { %s2175_s5 = smov 448   ;;  %s2176_s13 = smov 28  }
  0x36   :  { %32 = dma.hbm_to_vmem [thread:$0]  %s2391_s0, 896, %s27_s15, [#allocation3], %s2175_s5, %s2175_s5, %s2176_s13  }
  0x37   :  { %s2177_s23 = smov [#allocation7]   ;;  %s2178_s25 = smov [#allocation10]  }
  0x38   :  { %s52_s1 = sshll.u32 %s2177_s23, 4  ;;  %s80_s26 = sshll.u32 %s2178_s25, 4  ;;  %s53_s1 = int_to_ptr.vmem [resolvable:$true] %s52_s1  ;;  %s81_s26 = int_to_ptr.vmem [resolvable:$true] %s80_s26 }
  0x39   :  { %s2070_s12 = scalar_lea.hbm %s2394_s3, 2048 }
  0x3a   :  { %p2071_p10 = scmp.ne.s32.totalorder %s2394_s3, %s2070_s12  ;;  %p2074_p11 = scmp.lt.u32.totalorder %s2070_s12, %s2394_s3 }
  0x3c   :  { %p2076_p12 = pnand %p2074_p11, %p2071_p10 }
  0x3e   :  { %2079 = shalt.err (!%p2076_p12)
}
  0x3f   :  { %s2080_s0 = scalar_lea.vmem %s53_s1, 2048  ;;  %p2085_p0 = scmp.lt.s32.totalorder %s53_s1, %s53_s1 }
  0x40   :  { %p2081_p13 = scmp.ne.s32.totalorder %s53_s1, %s2080_s0  ;;  %p2086_p1 = scmp.lt.s32.totalorder %s2080_s0, %s2080_s0 }
  0x42   :  { %p2087_p2 = por %p2086_p1, %p2085_p0 }
  0x44   :  { %p2088_p3 = pnand %p2087_p2, %p2081_p13 }
  0x46   :  { %2091 = shalt.err (!%p2088_p3)
}
  0x47   :  { %58 = dma.hbm_to_vmem [thread:$0]  %s2394_s3, 2048, %s53_s1, [#allocation6], %s2173_s18, %s2173_s18, %s2174_s24  }
  0x48   :  { %s2092_s21 = scalar_lea.hbm %s2398_s7, 1024 }
  0x49   :  { %p2093_p4 = scmp.ne.s32.totalorder %s2398_s7, %s2092_s21  ;;  %p2096_p5 = scmp.lt.u32.totalorder %s2092_s21, %s2398_s7 }
  0x4b   :  { %p2098_p6 = pnand %p2096_p5, %p2093_p4 }
  0x4d   :  { %2101 = shalt.err (!%p2098_p6)
}
  0x4e   :  { %s2102_s30 = scalar_lea.vmem %s81_s26, 1024  ;;  %p2107_p8 = scmp.lt.s32.totalorder %s81_s26, %s81_s26 }
  0x4f   :  { %p2103_p7 = scmp.ne.s32.totalorder %s81_s26, %s2102_s30  ;;  %p2108_p9 = scmp.lt.s32.totalorder %s2102_s30, %s2102_s30 }
  0x51   :  { %p2109_p10 = por %p2108_p9, %p2107_p8 }
  0x53   :  { %p2110_p11 = pnand %p2109_p10, %p2103_p7 }
  0x55   :  { %2113 = shalt.err (!%p2110_p11)
}
  0x56   :  { %86 = dma.hbm_to_vmem [thread:$0]  %s2398_s7, 1024, %s81_s26, [#allocation9], %s2173_s18, %s2173_s18, %s2174_s24  }
  0x57   :  { %s2179_s12 = smov [#allocation11]   ;;  %s2114_s19 = scalar_lea.hbm %s2400_s9, 1024 }
  0x58   :  { %s94_s14 = sshll.u32 %s2179_s12, 4  ;;  %p2115_p12 = scmp.ne.s32.totalorder %s2400_s9, %s2114_s19  ;;  %s95_s14 = int_to_ptr.vmem [resolvable:$true] %s94_s14 }
  0x59   :  { %p2118_p13 = scmp.lt.u32.totalorder %s2114_s19, %s2400_s9 }
  0x5b   :  { %p2120_p0 = pnand %p2118_p13, %p2115_p12 }
  0x5d   :  { %2123 = shalt.err (!%p2120_p0)
}
  0x5e   :  { %s2124_s13 = scalar_lea.vmem %s95_s14, 1024  ;;  %p2129_p2 = scmp.lt.s32.totalorder %s95_s14, %s95_s14 }
  0x5f   :  { %p2125_p1 = scmp.ne.s32.totalorder %s95_s14, %s2124_s13  ;;  %p2130_p3 = scmp.lt.s32.totalorder %s2124_s13, %s2124_s13 }
  0x61   :  { %p2131_p4 = por %p2130_p3, %p2129_p2 }
  0x63   :  { %p2132_p5 = pnand %p2131_p4, %p2125_p1 }
  0x65   :  { %2135 = shalt.err (!%p2132_p5)
}
  0x66   :  { %100 = dma.hbm_to_vmem [thread:$0]  %s2400_s9, 1024, %s95_s14, [#allocation12], %s2173_s18, %s2173_s18, %s2174_s24  }
  0x67   :  { %2158 = dma.done.wait [#allocation3], 896  }
  0x68   :  { %2159 = vsyncadd [#allocation3], 4294966400 }
  0x69   :  { %2160 = dma.done.wait [#allocation6], 14592  }
  0x6a   :  { %2161 = vsyncadd [#allocation6], 4294952704 }
  0x6b   :  { %2162 = dma.done.wait [#allocation9], 2048  }
  0x6c   :  { %2163 = vsyncadd [#allocation9], 4294965248 }
  0x6d   :  { %2164 = dma.done.wait [#allocation12], 1024  }
  0x6e   :  { %2165 = vsyncadd [#allocation12], 4294966272  ;;  %v1799_v0 = vld [vmem:[#allocation5 + $0x104] ss:$8 sps:$4 sm:$0xff]   ;;  %v1801_v1 = vld [vmem:[#allocation5 + $0x100] ss:$8 sps:$4 sm:$0xff]  }
  0x6f   :  { %812 = vmatprep.subr.bf16.mxu0 %v1799_v0  ;;  %v1802_v2 = vld [vmem:[#allocation5 + $0x114] ss:$8 sps:$4 sm:$0xff]   ;;  %v1804_v3 = vld [vmem:[#allocation5 + $0x110] ss:$8 sps:$4 sm:$0xff]   ;;  %v1805_v4 = vld [vmem:[#allocation5 + $0x124] ss:$8 sps:$4 sm:$0xff]  }
  0x70   :  { %813 = vmatpush1.bf16.msra.mxu0 %v1801_v1  ;;  %v1807_v5 = vld [vmem:[#allocation5 + $0x120] ss:$8 sps:$4 sm:$0xff]   ;;  %v1808_v6 = vld [vmem:[#allocation5 + $0x134] ss:$8 sps:$4 sm:$0xff]   ;;  %v1810_v7 = vld [vmem:[#allocation5 + $0x130] ss:$8 sps:$4 sm:$0xff]  }
  0x71   :  { %814 = vmatprep.subr.bf16.mxu0 %v1802_v2  ;;  %v1811_v8 = vld [vmem:[#allocation5 + $0x144] ss:$8 sps:$4 sm:$0xff]   ;;  %v1813_v9 = vld [vmem:[#allocation5 + $0x140] ss:$8 sps:$4 sm:$0xff]   ;;  %v1814_v10 = vld [vmem:[#allocation5 + $0x154] ss:$8 sps:$4 sm:$0xff]  }
  0x72   :  { %v1816_v11 = vld [vmem:[#allocation5 + $0x150] ss:$8 sps:$4 sm:$0xff]   ;;  %v1817_v12 = vld [vmem:[#allocation5 + $0x164] ss:$8 sps:$4 sm:$0xff]   ;;  %v1819_v14 = vld [vmem:[#allocation5 + $0x160] ss:$8 sps:$4 sm:$0xff]  }
  0x73   :  { %v1849_v13 = vld [vmem:[#allocation2 + $0xc] ss:$28 sps:$4 sm:$0xff]   ;;  %v1856_v16 = vld [vmem:[#allocation5 + $0x4] ss:$8 sps:$4 sm:$0xff]   ;;  %v1861_v19 = vld [vmem:[#allocation5] ss:$8 sps:$4 sm:$0xff]  }
  0x74   :  { %815 = vmatpush1.bf16.msra.mxu0 %v1804_v3  ;;  %v1820_v15 = vld [vmem:[#allocation5 + $0x174] ss:$8 sps:$4 sm:$0xff]   ;;  %844 = vmatprep.mubr.bf16.mxu0 %v1849_v13  ;;  %v1822_v17 = vld [vmem:[#allocation5 + $0x170] ss:$8 sps:$4 sm:$0xff]   ;;  %v1823_v18 = vld [vmem:[#allocation5 + $0x184] ss:$8 sps:$4 sm:$0xff]  }
  0x75   :  { %816 = vmatprep.subr.bf16.mxu0 %v1805_v4  ;;  %769 = vmatprep.subr.bf16.mxu1 %v1856_v16  ;;  %v1862_v20 = vld [vmem:[#allocation5 + $0x14] ss:$8 sps:$4 sm:$0xff]   ;;  %v1825_v21 = vld [vmem:[#allocation5 + $0x180] ss:$8 sps:$4 sm:$0xff]   ;;  %v1867_v22 = vld [vmem:[#allocation5 + $0x10] ss:$8 sps:$4 sm:$0xff]  }
  0x76   :  { %770 = vmatpush1.bf16.msra.mxu1 %v1861_v19  ;;  %v1868_v23 = vld [vmem:[#allocation5 + $0x24] ss:$8 sps:$4 sm:$0xff]   ;;  %v1826_v24 = vld [vmem:[#allocation5 + $0x194] ss:$8 sps:$4 sm:$0xff]   ;;  %v1873_v25 = vld [vmem:[#allocation5 + $0x20] ss:$8 sps:$4 sm:$0xff]  }
  0x77   :  { %771 = vmatprep.subr.bf16.mxu1 %v1862_v20  ;;  %v1874_v26 = vld [vmem:[#allocation5 + $0x34] ss:$8 sps:$4 sm:$0xff]   ;;  %v1828_v27 = vld [vmem:[#allocation5 + $0x190] ss:$8 sps:$4 sm:$0xff]   ;;  %v1829_v28 = vld [vmem:[#allocation5 + $0x1a4] ss:$8 sps:$4 sm:$0xff]  }
  0x78   :  { %817 = vmatpush1.bf16.msra.mxu0 %v1807_v5  ;;  %v1879_v29 = vld [vmem:[#allocation5 + $0x30] ss:$8 sps:$4 sm:$0xff]   ;;  %v1880_v30 = vld [vmem:[#allocation5 + $0x44] ss:$8 sps:$4 sm:$0xff]   ;;  %v1831_v31 = vld [vmem:[#allocation5 + $0x1a0] ss:$8 sps:$4 sm:$0xff]  }
  0x79   :  { %818 = vmatprep.subr.bf16.mxu0 %v1808_v6  ;;  %v1832_v32 = vld [vmem:[#allocation5 + $0x1b4] ss:$8 sps:$4 sm:$0xff]   ;;  %v1885_v33 = vld [vmem:[#allocation5 + $0x40] ss:$8 sps:$4 sm:$0xff]   ;;  %v1834_v35 = vld [vmem:[#allocation5 + $0x1b0] ss:$8 sps:$4 sm:$0xff]  }
  0x7a   :  { %772 = vmatpush1.bf16.msra.mxu1 %v1867_v22  ;;  %v1886_v34 = vld [vmem:[#allocation5 + $0x54] ss:$8 sps:$4 sm:$0xff]   ;;  %v1835_v36 = vld [vmem:[#allocation5 + $0x1c4] ss:$8 sps:$4 sm:$0xff]   ;;  %v1891_v37 = vld [vmem:[#allocation5 + $0x50] ss:$8 sps:$4 sm:$0xff]  }
  0x7b   :  { %773 = vmatprep.subr.bf16.mxu1 %v1868_v23  ;;  %v1892_v38 = vld [vmem:[#allocation5 + $0x64] ss:$8 sps:$4 sm:$0xff]   ;;  %v1837_v39 = vld [vmem:[#allocation5 + $0x1c0] ss:$8 sps:$4 sm:$0xff]   ;;  %v1838_v40 = vld [vmem:[#allocation5 + $0x1d4] ss:$8 sps:$4 sm:$0xff]  }
  0x7c   :  { %819 = vmatpush1.bf16.msra.mxu0 %v1810_v7  ;;  %v1897_v41 = vld [vmem:[#allocation5 + $0x60] ss:$8 sps:$4 sm:$0xff]   ;;  %v1898_v42 = vld [vmem:[#allocation5 + $0x74] ss:$8 sps:$4 sm:$0xff]   ;;  %v1840_v43 = vld [vmem:[#allocation5 + $0x1d0] ss:$8 sps:$4 sm:$0xff]  }
  0x7d   :  { %820 = vmatprep.subr.bf16.mxu0 %v1811_v8  ;;  %v1841_v44 = vld [vmem:[#allocation5 + $0x1e4] ss:$8 sps:$4 sm:$0xff]   ;;  %v1903_v45 = vld [vmem:[#allocation5 + $0x70] ss:$8 sps:$4 sm:$0xff]   ;;  %v1843_v47 = vld [vmem:[#allocation5 + $0x1e0] ss:$8 sps:$4 sm:$0xff]  }
  0x7e   :  { %774 = vmatpush1.bf16.msra.mxu1 %v1873_v25  ;;  %v1904_v46 = vld [vmem:[#allocation5 + $0x84] ss:$8 sps:$4 sm:$0xff]   ;;  %v1844_v48 = vld [vmem:[#allocation5 + $0x1f4] ss:$8 sps:$4 sm:$0xff]   ;;  %v1909_v49 = vld [vmem:[#allocation5 + $0x80] ss:$8 sps:$4 sm:$0xff]  }
  0x7f   :  { %775 = vmatprep.subr.bf16.mxu1 %v1874_v26  ;;  %v1910_v50 = vld [vmem:[#allocation5 + $0x94] ss:$8 sps:$4 sm:$0xff]   ;;  %v1846_v51 = vld [vmem:[#allocation5 + $0x1f0] ss:$8 sps:$4 sm:$0xff]   ;;  %v1852_v52 = vld [vmem:[#allocation5 + $0x204] ss:$8 sps:$4 sm:$0xff]  }
  0x80   :  { %821 = vmatpush1.bf16.msra.mxu0 %v1813_v9  ;;  %v1915_v53 = vld [vmem:[#allocation5 + $0x90] ss:$8 sps:$4 sm:$0xff]   ;;  %v1916_v55 = vld [vmem:[#allocation5 + $0xa4] ss:$8 sps:$4 sm:$0xff]   ;;  %v1850_v56 = vld [vmem:[#allocation5 + $0x200] ss:$8 sps:$4 sm:$0xff]  }
  0x81   :  { %822 = vmatprep.subr.bf16.mxu0 %v1814_v10  ;;  %v1847_v54 = vld [vmem:[#allocation2 + $0x8] ss:$28 sps:$4 sm:$0xff]   ;;  %v1942_v57 = vld [vmem:[#allocation2 + $0x14] ss:$28 sps:$4 sm:$0xff]   ;;  %v1921_v59 = vld [vmem:[#allocation5 + $0xa0] ss:$8 sps:$4 sm:$0xff]  }
  0x82   :  { %776 = vmatpush1.bf16.msra.mxu1 %v1879_v29  ;;  %v1855_v58 = vld [vmem:[#allocation5 + $0x214] ss:$8 sps:$4 sm:$0xff]   ;;  %v1853_v61 = vld [vmem:[#allocation5 + $0x210] ss:$8 sps:$4 sm:$0xff]   ;;  %v1860_v62 = vld [vmem:[#allocation5 + $0x224] ss:$8 sps:$4 sm:$0xff]  }
  0x83   :  { %777 = vmatprep.subr.bf16.mxu1 %v1880_v30  ;;  %v1922_v60 = vld [vmem:[#allocation5 + $0xb4] ss:$8 sps:$4 sm:$0xff]   ;;  %v1927_v63 = vld [vmem:[#allocation5 + $0xb0] ss:$8 sps:$4 sm:$0xff]   ;;  %v1954_v0 = vld [vmem:[#allocation2 + $0x4] ss:$28 sps:$4 sm:$0xff]  }
  0x84   :  { %823 = vmatpush1.bf16.msra.mxu0 %v1816_v11  ;;  %v1928_v1 = vld [vmem:[#allocation5 + $0xc4] ss:$8 sps:$4 sm:$0xff]   ;;  %v1858_v2 = vld [vmem:[#allocation5 + $0x220] ss:$8 sps:$4 sm:$0xff]   ;;  %801 = vmatprep.mubr.bf16.mxu1 %v1954_v0  ;;  %v1866_v3 = vld [vmem:[#allocation5 + $0x234] ss:$8 sps:$4 sm:$0xff]  }
  0x85   :  { %824 = vmatprep.subr.bf16.mxu0 %v1817_v12  ;;  %v1933_v4 = vld [vmem:[#allocation5 + $0xc0] ss:$8 sps:$4 sm:$0xff]   ;;  %v1934_v5 = vld [vmem:[#allocation5 + $0xd4] ss:$8 sps:$4 sm:$0xff]   ;;  %v1864_v6 = vld [vmem:[#allocation5 + $0x230] ss:$8 sps:$4 sm:$0xff]  }
  0x86   :  { %778 = vmatpush1.bf16.msra.mxu1 %v1885_v33  ;;  %v1872_v7 = vld [vmem:[#allocation5 + $0x244] ss:$8 sps:$4 sm:$0xff]   ;;  %v1870_v8 = vld [vmem:[#allocation5 + $0x240] ss:$8 sps:$4 sm:$0xff]   ;;  %v1939_v9 = vld [vmem:[#allocation5 + $0xd0] ss:$8 sps:$4 sm:$0xff]  }
  0x87   :  { %779 = vmatprep.subr.bf16.mxu1 %v1886_v34  ;;  %v1943_v10 = vld [vmem:[#allocation5 + $0xe4] ss:$8 sps:$4 sm:$0xff]   ;;  %v1878_v11 = vld [vmem:[#allocation5 + $0x254] ss:$8 sps:$4 sm:$0xff]   ;;  %v1948_v12 = vld [vmem:[#allocation5 + $0xe0] ss:$8 sps:$4 sm:$0xff]  }
  0x88   :  { %825 = vmatpush1.bf16.msra.mxu0 %v1819_v14  ;;  %v1949_v13 = vld [vmem:[#allocation5 + $0xf4] ss:$8 sps:$4 sm:$0xff]   ;;  %v1876_v14 = vld [vmem:[#allocation5 + $0x250] ss:$8 sps:$4 sm:$0xff]   ;;  %v1952_v19 = vld [vmem:[#allocation2] ss:$28 sps:$4 sm:$0xff]  }
  0x89   :  { %826 = vmatprep.subr.bf16.mxu0 %v1820_v15  ;;  %v1884_v15 = vld [vmem:[#allocation5 + $0x264] ss:$8 sps:$4 sm:$0xff]   ;;  %v1951_v16 = vld [vmem:[#allocation5 + $0xf0] ss:$8 sps:$4 sm:$0xff]   ;;  %v1894_v22 = vld [vmem:[#allocation5 + $0x280] ss:$8 sps:$4 sm:$0xff]  }
  0x8a   :  { %780 = vmatpush1.bf16.msra.mxu1 %v1891_v37  ;;  %v1888_v20 = vld [vmem:[#allocation5 + $0x270] ss:$8 sps:$4 sm:$0xff]   ;;  %v1902_v23 = vld [vmem:[#allocation5 + $0x294] ss:$8 sps:$4 sm:$0xff]   ;;  %v1908_v25 = vld [vmem:[#allocation5 + $0x2a4] ss:$8 sps:$4 sm:$0xff]  }
  0x8b   :  { %781 = vmatprep.subr.bf16.mxu1 %v1892_v38  ;;  %v1906_v26 = vld [vmem:[#allocation5 + $0x2a0] ss:$8 sps:$4 sm:$0xff]   ;;  %v1920_v29 = vld [vmem:[#allocation5 + $0x2c4] ss:$8 sps:$4 sm:$0xff]   ;;  %v1940_v38 = vld [vmem:[#allocation2 + $0x10] ss:$28 sps:$4 sm:$0xff]  }
  0x8c   :  { %827 = vmatpush1.bf16.msra.mxu0 %v1822_v17  ;;  %v1882_v17 = vld [vmem:[#allocation5 + $0x260] ss:$8 sps:$4 sm:$0xff]   ;;  %v1932_v33 = vld [vmem:[#allocation5 + $0x2e4] ss:$8 sps:$4 sm:$0xff]   ;;  %vm765_vm0 = vcmask 130048   ;;  %vm2182_vm1 = vmmov 0  }
  0x8d   :  { %828 = vmatprep.subr.bf16.mxu0 %v1823_v18  ;;  %v1890_v18 = vld [vmem:[#allocation5 + $0x274] ss:$8 sps:$4 sm:$0xff]   ;;  %v1918_v30 = vld [vmem:[#allocation5 + $0x2c0] ss:$8 sps:$4 sm:$0xff]   ;;  %v1947_v37 = vld [vmem:[#allocation5 + $0x304] ss:$8 sps:$4 sm:$0xff]  }
  0x8e   :  { %782 = vmatpush1.bf16.msra.mxu1 %v1897_v41  ;;  %v1930_v34 = vld [vmem:[#allocation5 + $0x2e0] ss:$8 sps:$4 sm:$0xff]   ;;  %v2180_v41 = vmov 0  }
  0x8f   :  { %783 = vmatprep.subr.bf16.mxu1 %v1898_v42  ;;  %v1955_v42 = vld [vmem:[#allocation2 + $0x18] ss:$28 sps:$4 sm:$0xff]  }
  0x90   :  { %829 = vmatpush1.bf16.msra.mxu0 %v1825_v21  ;;  %v1896_v21 = vld [vmem:[#allocation5 + $0x284] ss:$8 sps:$4 sm:$0xff]  }
  0x91   :  { %830 = vmatprep.subr.bf16.mxu0 %v1826_v24  ;;  %v1900_v24 = vld [vmem:[#allocation5 + $0x290] ss:$8 sps:$4 sm:$0xff]  }
  0x92   :  { %784 = vmatpush1.bf16.msra.mxu1 %v1903_v45  ;;  %v1959_v45 = vld [vmem:[#allocation7 + $0x8] sm:$0xff]  }
  0x93   :  { %785 = vmatprep.subr.bf16.mxu1 %v1904_v46  ;;  %v1960_v46 = vld [vmem:[#allocation7 + $0x50] sm:$0xff]  }
  0x94   :  { %831 = vmatpush1.bf16.msra.mxu0 %v1828_v27  ;;  %v1914_v27 = vld [vmem:[#allocation5 + $0x2b4] ss:$8 sps:$4 sm:$0xff]  }
  0x95   :  { %832 = vmatprep.subr.bf16.mxu0 %v1829_v28  ;;  %v1912_v28 = vld [vmem:[#allocation5 + $0x2b0] ss:$8 sps:$4 sm:$0xff]  }
  0x96   :  { %786 = vmatpush1.bf16.msra.mxu1 %v1909_v49  ;;  %v1963_v49 = vld [vmem:[#allocation7 + $0x18] sm:$0xff]  }
  0x97   :  { %787 = vmatprep.subr.bf16.mxu1 %v1910_v50  ;;  %v1964_v50 = vld [vmem:[#allocation7 + $0x60] sm:$0xff]  }
  0x98   :  { %833 = vmatpush1.bf16.msra.mxu0 %v1831_v31  ;;  %v1926_v31 = vld [vmem:[#allocation5 + $0x2d4] ss:$8 sps:$4 sm:$0xff]  }
  0x99   :  { %834 = vmatprep.subr.bf16.mxu0 %v1832_v32  ;;  %v1924_v32 = vld [vmem:[#allocation5 + $0x2d0] ss:$8 sps:$4 sm:$0xff]  }
  0x9a   :  { %788 = vmatpush1.bf16.msra.mxu1 %v1915_v53  ;;  %v1967_v53 = vld [vmem:[#allocation7 + $0x28] sm:$0xff]  }
  0x9b   :  { %789 = vmatprep.subr.bf16.mxu1 %v1916_v55  ;;  %v1969_v55 = vld [vmem:[#allocation7 + $0x30] sm:$0xff]  }
  0x9c   :  { %835 = vmatpush1.bf16.msra.mxu0 %v1834_v35  ;;  %v1938_v35 = vld [vmem:[#allocation5 + $0x2f4] ss:$8 sps:$4 sm:$0xff]  }
  0x9d   :  { %836 = vmatprep.subr.bf16.mxu0 %v1835_v36  ;;  %v1936_v36 = vld [vmem:[#allocation5 + $0x2f0] ss:$8 sps:$4 sm:$0xff]  }
  0x9e   :  { %790 = vmatpush1.bf16.msra.mxu1 %v1921_v59  ;;  %v2181_v59 = vmov 0.0  }
  0x9f   :  { %791 = vmatprep.subr.bf16.mxu1 %v1922_v60  ;;  %v1973_v60 = vld [vmem:[#allocation8 + $0x8] sm:$0xff]  }
  0xa0   :  { %837 = vmatpush1.bf16.msra.mxu0 %v1837_v39  ;;  %v1945_v39 = vld [vmem:[#allocation5 + $0x300] ss:$8 sps:$4 sm:$0xff]  }
  0xa1   :  { %838 = vmatprep.subr.bf16.mxu0 %v1838_v40  ;;  %v1956_v40 = vld [vmem:[#allocation7 + $0x40] sm:$0xff]  }
  0xa2   :  { %792 = vmatpush1.bf16.msra.mxu1 %v1927_v63  ;;  %v1976_v63 = vld [vmem:[#allocation8 + $0x20] sm:$0xff]  }
  0xa3   :  { %793 = vmatprep.subr.bf16.mxu1 %v1928_v1 }
  0xa4   :  { %839 = vmatpush1.bf16.msra.mxu0 %v1840_v43  ;;  %v1957_v43 = vld [vmem:[#allocation7] sm:$0xff]  }
  0xa5   :  { %840 = vmatprep.subr.bf16.mxu0 %v1841_v44  ;;  %v1958_v44 = vld [vmem:[#allocation7 + $0x48] sm:$0xff]  }
  0xa6   :  { %794 = vmatpush1.bf16.msra.mxu1 %v1933_v4  ;;  %v230_v4 = vlaneseq }
  0xa7   :  { %795 = vmatprep.subr.bf16.mxu1 %v1934_v5 }
  0xa8   :  { %841 = vmatpush1.bf16.msra.mxu0 %v1843_v47  ;;  %v1961_v47 = vld [vmem:[#allocation7 + $0x10] sm:$0xff]   ;;  %v231_v5 = vshrl.u32 %v230_v4, 7  ;;  %v1993_v4 = vld [vmem:[#allocation11 + $0x28] sm:$0xff]  }
  0xa9   :  { %842 = vmatprep.subr.bf16.mxu0 %v1844_v48  ;;  %v1962_v48 = vld [vmem:[#allocation7 + $0x58] sm:$0xff]  }
  0xaa   :  { %796 = vmatpush1.bf16.msra.mxu1 %v1939_v9 }
  0xab   :  { %797 = vmatprep.subr.bf16.mxu1 %v1943_v10 }
  0xac   :  { %843 = vmatpush1.bf16.msra.mxu0 %v1846_v51  ;;  %v1965_v51 = vld [vmem:[#allocation7 + $0x20] sm:$0xff]  }
  0xad   :  { %855 = vmatprep.subr.bf16.mxu0 %v1852_v52  ;;  %v1966_v52 = vld [vmem:[#allocation7 + $0x68] sm:$0xff]  }
  0xae   :  { %798 = vmatpush1.bf16.msra.mxu1 %v1948_v12 }
  0xaf   :  { %845 = vmatmul.mubr.bf16.vlgmr.msra.gmra.mrb[0].mxu0 %v1847_v54  ;;  %799 = vmatprep.subr.bf16.mxu1 %v1949_v13  ;;  %v1968_v54 = vld [vmem:[#allocation7 + $0x70] sm:$0xff]  }
  0xb0   :  { %856 = vmatpush1.bf16.msra.mxu0 %v1850_v56  ;;  %887 = vmatprep.mubr.bf16.mxu0 %v1942_v57  ;;  %v1970_v56 = vld [vmem:[#allocation7 + $0x78] sm:$0xff]  }
  0xb1   :  { %857 = vmatprep.subr.bf16.mxu0 %v1855_v58  ;;  %v1971_v57 = vld [vmem:[#allocation7 + $0x38] sm:$0xff]   ;;  %v1972_v58 = vld [vmem:[#allocation8] sm:$0xff]  }
  0xb2   :  { %800 = vmatpush1.bf16.msra.mxu1 %v1951_v16 }
  0xb3   :  { %1707 = vmatprep.subr.bf16.mxu1 %v2181_v59 }
  0xb4   :  { %858 = vmatpush1.bf16.msra.mxu0 %v1853_v61  ;;  %v1974_v61 = vld [vmem:[#allocation8 + $0x10] sm:$0xff]  }
  0xb5   :  { %859 = vmatprep.subr.bf16.mxu0 %v1860_v62  ;;  %802 = vmatmul.mubr.bf16.vlgmr.msra.gmra.mrb[0].mxu1 %v1952_v19  ;;  %v1975_v62 = vld [vmem:[#allocation8 + $0x18] sm:$0xff]  }
  0xb6   :  { %1708 = vmatpush3.bf16.msra.mxu1 %v1972_v58  ;;  %1723 = vmatprep.mubr.msk.bf16.mxu1 %vm2182_vm1, %v2181_v59 }
  0xb7   :  { %1709 = vmatprep.subr.bf16.mxu1 %v2181_v59 }
  0xb8   :  { %860 = vmatpush1.bf16.msra.mxu0 %v1858_v2 }
  0xb9   :  { %861 = vmatprep.subr.bf16.mxu0 %v1866_v3 }
  0xba   :  { %1710 = vmatpush3.bf16.msra.mxu1 %v1973_v60 }
  0xbb   :  { %1711 = vmatprep.subr.bf16.mxu1 %v2181_v59 }
  0xbc   :  { %862 = vmatpush1.bf16.msra.mxu0 %v1864_v6  ;;  %v232_v6 = vsub.s32 0, %v231_v5 }
  0xbd   :  { %863 = vmatprep.subr.bf16.mxu0 %v1872_v7  ;;  %v228_v7 = vld [vmem:[%s2393_s2] sm:$0x3] }
  0xbe   :  { %1712 = vmatpush3.bf16.msra.mxu1 %v1974_v61  ;;  %v233_v9 = vrot.slane %v228_v7, %v232_v6  ;;  %v1995_v6 = vld [vmem:[#allocation11 + $0x38] sm:$0xff]  }
  0xbf   :  { %1713 = vmatprep.subr.bf16.mxu1 %v2181_v59 }
  0xc0   :  { %864 = vmatpush1.bf16.msra.mxu0 %v1870_v8  ;;  %v236_v8 = vsub.s32 1, %v231_v5  ;;  %v1994_v5 = vld [vmem:[#allocation11 + $0x30] sm:$0xff]  }
  0xc1   :  { %865 = vmatprep.subr.bf16.mxu0 %v1878_v11 }
  0xc2   :  { %1714 = vmatpush3.bf16.msra.mxu1 %v1975_v62  ;;  %v237_v10 = vrot.slane %v228_v7, %v236_v8  ;;  %v1988_v62 = vld [vmem:[#allocation11] sm:$0xff]   ;;  %v1640_v7 = vld [vmem:[%s2399_s8] ss:$0 sm:$0xff]  ;;  %s2183_s8 = smov [#allocation13]  }
  0xc3   :  { %1715 = vmatprep.subr.bf16.mxu1 %v2181_v59 }
  0xc4   :  { %866 = vmatpush1.bf16.msra.mxu0 %v1876_v14 }
  0xc5   :  { %867 = vmatprep.subr.bf16.mxu0 %v1884_v15 }
  0xc6   :  { %1716 = vmatpush3.bf16.msra.mxu1 %v1976_v63 }
  0xc7   :  { %1717 = vmatprep.subr.bf16.mxu1 %v2181_v59 }
  0xc8   :  { %868 = vmatpush1.bf16.msra.mxu0 %v1882_v17 }
  0xc9   :  { %869 = vmatprep.subr.bf16.mxu0 %v1890_v18 }
  0xcc   :  { %870 = vmatpush1.bf16.msra.mxu0 %v1888_v20 }
  0xcd   :  { %871 = vmatprep.subr.bf16.mxu0 %v1896_v21 }
  0xd0   :  { %872 = vmatpush1.bf16.msra.mxu0 %v1894_v22 }
  0xd1   :  { %873 = vmatprep.subr.bf16.mxu0 %v1902_v23 }
  0xd4   :  { %874 = vmatpush1.bf16.msra.mxu0 %v1900_v24 }
  0xd5   :  { %875 = vmatprep.subr.bf16.mxu0 %v1908_v25 }
  0xd8   :  { %876 = vmatpush1.bf16.msra.mxu0 %v1906_v26 }
  0xd9   :  { %877 = vmatprep.subr.bf16.mxu0 %v1914_v27 }
  0xdc   :  { %878 = vmatpush1.bf16.msra.mxu0 %v1912_v28 }
  0xdd   :  { %879 = vmatprep.subr.bf16.mxu0 %v1920_v29  ;;  %v1977_v29 = vld [vmem:[#allocation8 + $0x28] sm:$0xff]  }
  0xde   :  { %1718 = vmatpush3.bf16.msra.mxu1 %v1977_v29 }
  0xdf   :  { %1719 = vmatprep.subr.bf16.mxu1 %v2181_v59 }
  0xe0   :  { %880 = vmatpush1.bf16.msra.mxu0 %v1918_v30  ;;  %v1978_v30 = vld [vmem:[#allocation8 + $0x30] sm:$0xff]  }
  0xe1   :  { %881 = vmatprep.subr.bf16.mxu0 %v1926_v31  ;;  %v1979_v31 = vld [vmem:[#allocation8 + $0x38] sm:$0xff]  }
  0xe2   :  { %1720 = vmatpush3.bf16.msra.mxu1 %v1978_v30 }
  0xe3   :  { %1721 = vmatprep.subr.bf16.mxu1 %v2181_v59 }
  0xe4   :  { %882 = vmatpush1.bf16.msra.mxu0 %v1924_v32 }
  0xe5   :  { %883 = vmatprep.subr.bf16.mxu0 %v1932_v33  ;;  %v1614_v33 = vld [vmem:[%s2395_s4] ss:$0 sm:$0xff] }
  0xe6   :  { %1722 = vmatpush3.bf16.msra.mxu1 %v1979_v31 }
  0xe7   :  { %1727 = vmatprep.subr.bf16.mxu1 %v2181_v59 }
  0xe8   :  { %884 = vmatpush1.bf16.msra.mxu0 %v1930_v34 }
  0xe9   :  { %885 = vmatprep.subr.bf16.mxu0 %v1938_v35 }
  0xec   :  { %886 = vmatpush1.bf16.msra.mxu0 %v1936_v36 }
  0xed   :  { %898 = vmatprep.subr.bf16.mxu0 %v1947_v37 }
  0xef   :  { %888 = vmatmul.mubr.bf16.vlgmr.msra.gmra.mrb[0].mxu0 %v1940_v38 }
  0xf0   :  { %899 = vmatpush1.bf16.msra.mxu0 %v1945_v39  ;;  %930 = vmatprep.mubr.bf16.mxu0 %v2180_v41 }
  0xf1   :  { %1658 = vmatprep.subr.bf16.mxu0 %v1956_v40 }
  0xfb   :  { %1613 = vmatmul.mubr.msk.bf16.vlgmr.msra.gmra.mrb[0].mxu0 %vm765_vm0, %v1955_v42 }
  0xfc   :  { %1659 = vmatpush3.bf16.msra.mxu0 %v1957_v43  ;;  %v1980_v43 = vld [vmem:[#allocation10] sm:$0xff]  }
  0xfd   :  { %1660 = vmatprep.subr.bf16.mxu0 %v1958_v44 }
 0x100   :  { %1661 = vmatpush3.bf16.msra.mxu0 %v1959_v45  ;;  %v1981_v45 = vld [vmem:[#allocation10 + $0x8] sm:$0xff]  }
 0x101   :  { %1662 = vmatprep.subr.bf16.mxu0 %v1960_v46  ;;  %v1982_v46 = vld [vmem:[#allocation10 + $0x10] sm:$0xff]  }
 0x104   :  { %1663 = vmatpush3.bf16.msra.mxu0 %v1961_v47  ;;  %v1983_v47 = vld [vmem:[#allocation10 + $0x18] sm:$0xff]  }
 0x105   :  { %1664 = vmatprep.subr.bf16.mxu0 %v1962_v48  ;;  %v1984_v48 = vld [vmem:[#allocation10 + $0x20] sm:$0xff]  }
 0x108   :  { %1665 = vmatpush3.bf16.msra.mxu0 %v1963_v49  ;;  %v1985_v49 = vld [vmem:[#allocation10 + $0x28] sm:$0xff]  }
 0x109   :  { %1666 = vmatprep.subr.bf16.mxu0 %v1964_v50  ;;  %v1986_v50 = vld [vmem:[#allocation10 + $0x30] sm:$0xff]  }
 0x10c   :  { %1667 = vmatpush3.bf16.msra.mxu0 %v1965_v51  ;;  %v1987_v51 = vld [vmem:[#allocation10 + $0x38] sm:$0xff]  }
 0x10d   :  { %1668 = vmatprep.subr.bf16.mxu0 %v1966_v52  ;;  %v1631_v52 = vld [vmem:[%s2397_s6] ss:$0 sm:$0xff] }
 0x110   :  { %1669 = vmatpush3.bf16.msra.mxu0 %v1967_v53 }
 0x111   :  { %1670 = vmatprep.subr.bf16.mxu0 %v1968_v54 }
 0x114   :  { %1671 = vmatpush3.bf16.msra.mxu0 %v1969_v55 }
 0x115   :  { %1672 = vmatprep.subr.bf16.mxu0 %v1970_v56 }
 0x118   :  { %1673 = vmatpush3.bf16.msra.mxu0 %v1971_v57 }
 0x188   :  { %v803_v0 = vpop.f32.mrb[0].mxu1 }
 0x189   :  { %v805_v1 = vpop.f32.mrb[1].mxu1  ;;  %v804_v11 = vadd.f32 %v803_v0, %v233_v9  ;;  %v1989_v0 = vld [vmem:[#allocation11 + $0x8] sm:$0xff]  }
 0x18a   :  { %v807_v2 = vpop.f32.mrb[2].mxu1  ;;  %v806_v12 = vadd.f32 %v805_v1, %v237_v10  ;;  %v1990_v1 = vld [vmem:[#allocation11 + $0x10] sm:$0xff]  }
 0x18b   :  { %v809_v3 = vpop.f32.mrb[3].mxu1  ;;  %v808_v14 = vadd.f32 %v807_v2, %v233_v9  ;;  %v1991_v2 = vld [vmem:[#allocation11 + $0x18] sm:$0xff]  }
 0x18c   :  { %v810_v17 = vadd.f32 %v809_v3, %v237_v10  ;;  %v1992_v3 = vld [vmem:[#allocation11 + $0x20] sm:$0xff]  }
 0x1ce   :  { %v932_v13 = vpop.f32.mrb[0].mxu0 }
 0x1cf   :  { %v1768_v15 = vadd.f32 %v932_v13, %v804_v11  ;;  %v934_v16 = vpop.f32.mrb[1].mxu0 }
 0x1d0   :  { %v1770_v18 = vadd.f32 %v934_v16, %v806_v12  ;;  %v936_v19 = vpop.f32.mrb[2].mxu0 }
 0x1d1   :  { %v1772_v20 = vadd.f32 %v936_v19, %v808_v14  ;;  %v938_v21 = vpop.f32.mrb[3].mxu0  ;;  %v941_v23 = vmax.f32 %v1768_v15, 0.0 }
 0x1d2   :  { %v1774_v22 = vadd.f32 %v938_v21, %v810_v17  ;;  %v942_v25 = vmax.f32 %v1770_v18, 0.0 }
 0x1d3   :  { %v943_v24 = vmax.f32 %v1772_v20, 0.0 }
 0x1d4   :  { %v944_v26 = vmax.f32 %v1774_v22, 0.0 }
 0x1d5   :  { %v945_v27 = vpack.c.bf16 %v943_v24, %v941_v23 }
 0x1d6   :  { %v946_v28 = vpack.c.bf16 %v944_v26, %v942_v25 }
 0x1d8   :  { %1114 = vmatprep.mubr.bf16.mxu0 %v946_v28 }
 0x1d9   :  { %1115 = vmatmul.mubr.bf16.vlgmr.msra.gmra.mrb[4].mxu0 %v945_v27 }
 0x2ac   :  { %v1674_v32 = vpop.f32.mrb[4].mxu0 }
 0x2ad   :  { %v1675_v34 = vpop.f32.mrb[5].mxu0 }
 0x2ae   :  { %v1676_v35 = vadd.f32 %v1675_v34, %v1674_v32  ;;  %v1677_v36 = vpop.f32.mrb[6].mxu0 }
 0x2af   :  { %v1678_v37 = vpop.f32.mrb[7].mxu0 }
 0x2b0   :  { %v1117_v38 = vadd.f32 %v1676_v35, %v1614_v33  ;;  %v1679_v39 = vadd.f32 %v1678_v37, %v1677_v36 }
 0x2b2   :  { %v1120_v40 = vadd.f32 %v1679_v39, %v1614_v33  ;;  %v1123_v41 = vmax.f32 %v1117_v38, 0.0 }
 0x2b4   :  { %v1124_v42 = vmax.f32 %v1120_v40, 0.0 }
 0x2b6   :  { %v1125_v44 = vpack.c.bf16 %v1124_v42, %v1123_v41 }
 0x2b8   :  { %1724 = vmatmul.mubr.bf16.vlgmr.msra.gmra.mrb[4].mxu1 %v1125_v44 }
 0x2b9   :  { %1728 = vmatpush3.bf16.msra.mxu1 %v1980_v43  ;;  %1743 = vmatprep.mubr.msk.bf16.mxu1 %vm2182_vm1, %v2181_v59 }
 0x2ba   :  { %1729 = vmatprep.subr.bf16.mxu1 %v2181_v59 }
 0x2bd   :  { %1730 = vmatpush3.bf16.msra.mxu1 %v1981_v45 }
 0x2be   :  { %1731 = vmatprep.subr.bf16.mxu1 %v2181_v59 }
 0x2c1   :  { %1732 = vmatpush3.bf16.msra.mxu1 %v1982_v46 }
 0x2c2   :  { %1733 = vmatprep.subr.bf16.mxu1 %v2181_v59 }
 0x2c5   :  { %1734 = vmatpush3.bf16.msra.mxu1 %v1983_v47 }
 0x2c6   :  { %1735 = vmatprep.subr.bf16.mxu1 %v2181_v59 }
 0x2c9   :  { %1736 = vmatpush3.bf16.msra.mxu1 %v1984_v48 }
 0x2ca   :  { %1737 = vmatprep.subr.bf16.mxu1 %v2181_v59 }
 0x2cd   :  { %1738 = vmatpush3.bf16.msra.mxu1 %v1985_v49 }
 0x2ce   :  { %1739 = vmatprep.subr.bf16.mxu1 %v2181_v59 }
 0x2d1   :  { %1740 = vmatpush3.bf16.msra.mxu1 %v1986_v50 }
 0x2d2   :  { %1741 = vmatprep.subr.bf16.mxu1 %v2181_v59 }
 0x2d5   :  { %1742 = vmatpush3.bf16.msra.mxu1 %v1987_v51 }
 0x2d6   :  { %1747 = vmatprep.subr.bf16.mxu1 %v2181_v59 }
 0x38b   :  { %v1231_v53 = vpop.f32.mrb[4].mxu1 }
 0x38c   :  { %v1232_v54 = vadd.f32 %v1631_v52, %v1231_v53  ;;  %v1725_v55 = vpop.f32.mrb[5].mxu1 }
 0x38d   :  { %v1234_v56 = vpop.f32.mrb[6].mxu1 }
 0x38e   :  { %v1235_v57 = vadd.f32 %v1631_v52, %v1234_v56  ;;  %v1726_v58 = vpop.f32.mrb[7].mxu1  ;;  %v1238_v60 = vmax.f32 %v1232_v54, 0.0 }
 0x390   :  { %v1239_v61 = vmax.f32 %v1235_v57, 0.0 }
 0x392   :  { %v1240_v63 = vpack.c.bf16 %v1239_v61, %v1238_v60 }
 0x394   :  { %1744 = vmatmul.mubr.bf16.vlgmr.msra.gmra.mrb[8].mxu1 %v1240_v63 }
 0x395   :  { %1748 = vmatpush3.bf16.msra.mxu1 %v1988_v62  ;;  %1763 = vmatprep.mubr.msk.bf16.mxu1 %vm2182_vm1, %v2181_v59 }
 0x396   :  { %1749 = vmatprep.subr.bf16.mxu1 %v2181_v59 }
 0x399   :  { %1750 = vmatpush3.bf16.msra.mxu1 %v1989_v0 }
 0x39a   :  { %1751 = vmatprep.subr.bf16.mxu1 %v2181_v59 }
 0x39d   :  { %1752 = vmatpush3.bf16.msra.mxu1 %v1990_v1 }
 0x39e   :  { %1753 = vmatprep.subr.bf16.mxu1 %v2181_v59 }
 0x3a1   :  { %1754 = vmatpush3.bf16.msra.mxu1 %v1991_v2 }
 0x3a2   :  { %1755 = vmatprep.subr.bf16.mxu1 %v2181_v59 }
 0x3a5   :  { %1756 = vmatpush3.bf16.msra.mxu1 %v1992_v3 }
 0x3a6   :  { %1757 = vmatprep.subr.bf16.mxu1 %v2181_v59 }
 0x3a9   :  { %1758 = vmatpush3.bf16.msra.mxu1 %v1993_v4 }
 0x3aa   :  { %1759 = vmatprep.subr.bf16.mxu1 %v2181_v59 }
 0x3ad   :  { %1760 = vmatpush3.bf16.msra.mxu1 %v1994_v5 }
 0x3ae   :  { %1761 = vmatprep.subr.bf16.mxu1 %v2181_v59  ;;  %v1649_v59 = vld [vmem:[%s2401_s10] ss:$0 sm:$0xff]  ;;  %s1493_s10 = sshll.u32 %s2183_s8, 4  ;;  %s1494_s10 = int_to_ptr.vmem [resolvable:$true] %s1493_s10 }
 0x3af   :  { %s2136_s29 = scalar_lea.vmem %s1494_s10, 256  ;;  %p2141_p7 = scmp.lt.s32.totalorder %s1494_s10, %s1494_s10 }
 0x3b0   :  { %p2137_p6 = scmp.ne.s32.totalorder %s1494_s10, %s2136_s29  ;;  %p2142_p8 = scmp.lt.s32.totalorder %s2136_s29, %s2136_s29 }
 0x3b1   :  { %1762 = vmatpush3.bf16.msra.mxu1 %v1995_v6 }
 0x3b2   :  { %p2143_p9 = por %p2142_p8, %p2141_p7 }
 0x3b4   :  { %p2144_p10 = pnand %p2143_p9, %p2137_p6 }
 0x467   :  { %v1346_v8 = vpop.f32.mrb[8].mxu1 }
 0x468   :  { %v1347_v9 = vadd.f32 %v1640_v7, %v1346_v8  ;;  %v1745_v10 = vpop.f32.mrb[9].mxu1 }
 0x469   :  { %v1349_v11 = vpop.f32.mrb[10].mxu1 }
 0x46a   :  { %v1350_v12 = vadd.f32 %v1640_v7, %v1349_v11  ;;  %v1746_v13 = vpop.f32.mrb[11].mxu1  ;;  %v1353_v14 = vmax.f32 %v1347_v9, 0.0 }
 0x46c   :  { %v1354_v15 = vmax.f32 %v1350_v12, 0.0 }
 0x46e   :  { %v1355_v16 = vpack.c.bf16 %v1354_v15, %v1353_v14 }
 0x470   :  { %1764 = vmatmul.mubr.bf16.vlgmr.msra.gmra.mrb[12].mxu1 %v1355_v16 }
 0x543   :  { %v1461_v17 = vpop.f32.mrb[12].mxu1 }
 0x544   :  { %v1462_v18 = vadd.f32 %v1649_v59, %v1461_v17  ;;  %v1765_v19 = vpop.f32.mrb[13].mxu1 }
 0x545   :  { %v1464_v20 = vpop.f32.mrb[14].mxu1 }
 0x546   :  { %1468 = vmax.xlane.f32.xlu0 %v1462_v18  ;;  %v1766_v21 = vpop.f32.mrb[15].mxu1  ;;  %v1465_v22 = vadd.f32 %v1649_v59, %v1464_v20 }
 0x54a   :  { %1470 = vmax.xlane.f32.xlu0 %v1465_v22 }
 0x5d3   :  { %v1469_v23 = vpop.xlane.xlu0 %1468 }
 0x5d4   :  { %v1472_v24 = vsub.f32 %v1462_v18, %v1469_v23 }
 0x5d6   :  { %v1474_v25 = vmul.f32 1.442695, %v1472_v24 }
 0x5d7   :  { %v1471_v26 = vpop.xlane.xlu0 %1470 }
 0x5d8   :  { %1996 = vpow2.f32 %v1474_v25  ;;  %v1473_v27 = vsub.f32 %v1465_v22, %v1471_v26 }
 0x5da   :  { %v1476_v28 = vmul.f32 1.442695, %v1473_v27 }
 0x5dc   :  { %1998 = vpow2.f32 %v1476_v28 }
 0x5e2   :  { %v1997_v29 = vpop.eup %1996 }
 0x5e3   :  { %1478 = vadd.xlane.f32.xlu1 %v1997_v29 }
 0x5e6   :  { %v1999_v30 = vpop.eup %1998 }
 0x5e7   :  { %1480 = vadd.xlane.f32.xlu1 %v1999_v30 }
 0x670   :  { %v1479_v31 = vpop.xlane.xlu1 %1478 }
 0x671   :  { %2000 = vrcp.f32 %v1479_v31 }
 0x674   :  { %v1481_v32 = vpop.xlane.xlu1 %1480 }
 0x675   :  { %2002 = vrcp.f32 %v1481_v32 }
 0x67b   :  { %v2001_v33 = vpop.eup %2000 }
 0x67c   :  { %v1484_v34 = vmul.f32 %v2001_v33, %v1997_v29 }
 0x67e   :  { %1486 = vst [vmem:[#allocation13] sm:$0xff] %v1484_v34 }
 0x67f   :  { %v2003_v35 = vpop.eup %2002 }
 0x680   :  { %v1485_v36 = vmul.f32 %v2003_v35, %v1999_v30 }
 0x682   :  { %1487 = vst [vmem:[#allocation13 + $0x8] sm:$0xff] %v1485_v36 }
 0x683   :  { %2147 = shalt.err (!%p2144_p10)
}
 0x684   :  { %s2148_s1 = scalar_lea.hbm %s2402_s11, 256 }
 0x685   :  { %p2149_p11 = scmp.ne.s32.totalorder %s2402_s11, %s2148_s1  ;;  %p2152_p12 = scmp.lt.u32.totalorder %s2148_s1, %s2402_s11 }
 0x687   :  { %p2154_p13 = pnand %p2152_p12, %p2149_p11 }
 0x689   :  { %2157 = shalt.err (!%p2154_p13)
}
 0x68a   :  { %1499 = dma.vmem_to_hbm [thread:$0]  %s1494_s10, 256, %s2402_s11, [#allocation4], %s2169_s27, %s2169_s27, %s2170_s28  }
 0x68b   :  { %2166 = dma.done.wait [#allocation4], 256  }
 0x68c   :  { %2167 = vsyncadd [#allocation4], 4294967040 }
 0x68d   :  { %1503 = vsyncpa [#allocation3], 1 }
 0x68e   :  { %1504 = vsyncpa [#allocation6], 1 }
 0x68f   :  { %1505 = vsyncpa [#allocation9], 1 }
 0x690   :  { %1506 = vsyncpa [#allocation12], 1 }
 0x691   :  { %1507 = vsyncpa [#allocation4], 1 }

</bundles_post_ra>
